<compile_context>
chip_gen: v5e
topology: v5e:2x2
jax: 0.10.0
libtpu: 0.0.40
codegen_flags: <defaults>
</compile_context>

<pallas_src>
import functools

import jax
import jax.numpy as jnp
from jax.experimental import pallas as pl
from jax.experimental.pallas import tpu as pltpu


def _choose_batch_block(batch):
    """Rows of the batch handled per grid step.

    Multiple of 8 (sublane aligned so the out-block second-minor dim satisfies
    the (8,128) rule), <= 256 rows/step, and >= 2 grid steps when the batch is
    large enough (v7x has 2 TensorCores sharing a "parallel" grid axis).
    """
    if batch <= 8:
        return 8
    for blk in (256, 128, 64, 32, 16, 8):
        if batch % blk == 0 and batch // blk >= 2:
            return blk
    # Batch not a nice multiple: 8-row blocks; input is zero-padded and the
    # output sliced back in the wrapper.
    return 8


def _persistence_kernel(x_ref, o_ref, *, pred_len, c_out):
    # x_ref: (blk, 1, c_out)            -- last time step, last c_out channels
    # o_ref: (blk, pred_len * c_out)    -- lane-dense flattened output rows
    blk = x_ref.shape[0]
    width = pred_len * c_out

    x = x_ref[...][:, 0, :]  # (blk, c_out)

    # Output row layout (row-major [pred_len, c_out] flattened) is the input
    # row tiled pred_len times: out[b, j] = x[b, j % c_out].
    lane = jax.lax.broadcasted_iota(jnp.int32, (blk, width), 1) % c_out
    out = jnp.zeros((blk, width), dtype=x.dtype)
    for c in range(c_out):  # unrolled; c_out is small when this path matters
        out = jnp.where(lane == c, x[:, c : c + 1], out)  # lane-broadcast select

    o_ref[...] = out.astype(o_ref.dtype)


def persistence_forward(x_enc, *, pred_len, c_out):
    """Pallas implementation of the Persistence model forward pass.

    Args:
      x_enc: [B, seq_len, C] array.
      pred_len: number of output time steps.
      c_out: number of output channels (taken from the tail of C).

    Returns:
      [B, pred_len, c_out] array with the same dtype as x_enc.
    """
    B, S, C = x_enc.shape
    assert 0 < c_out <= C, "c_out must not exceed the channel dim of x_enc"
    width = pred_len * c_out

    # (1) Slice in the wrapper: only the last time step / last c_out channels
    # ever reach the kernel, so no full-sequence DMA.
    x_last = x_enc[:, S - 1 : S, C - c_out :]  # (B, 1, c_out)

    # (2) Batch-block the grid.
    blk = _choose_batch_block(B)
    nblk = pl.cdiv(B, blk)
    b_pad = nblk * blk
    if b_pad != B:
        x_last = jnp.pad(x_last, ((0, b_pad - B), (0, 0), (0, 0)))

    kernel = functools.partial(_persistence_kernel, pred_len=pred_len, c_out=c_out)

    out2d = pl.pallas_call(
        kernel,
        out_shape=jax.ShapeDtypeStruct((b_pad, width), x_enc.dtype),
        grid=(nblk,),
        in_specs=[
            # Last two block dims (1, c_out) equal the full array dims; the
            # batch block rides on the unconstrained leading dim.
            pl.BlockSpec((blk, 1, c_out), lambda i: (i, 0, 0)),
        ],
        # (3) Lane-dense output slab: last dim = pred_len*c_out (full extent),
        # second-minor dim blk is a multiple of 8.
        out_specs=pl.BlockSpec((blk, width), lambda i: (i, 0)),
        compiler_params=pltpu.CompilerParams(
            dimension_semantics=("parallel",),
        ),
    )(x_last)

    if b_pad != B:
        out2d = out2d[:B]
    # Contiguous row-major layout of (B, width) == (B, pred_len, c_out): free reshape.
    return out2d.reshape(B, pred_len, c_out)


if __name__ == "__main__":
    # Small config consistent with the module's forward:
    #   seq_len=8, pred_len=6, label_len=4 (unused in forward), c_out=3, enc channels=4
    B, seq_len, C = 2, 8, 4
    pred_len, c_out = 6, 3

    key = jax.random.PRNGKey(0)
    x_enc = jax.random.normal(key, (B, seq_len, C), dtype=jnp.float32)

    out = persistence_forward(x_enc, pred_len=pred_len, c_out=c_out)
    out = jax.block_until_ready(out)

    # Pure-JAX reference for correctness check.
    ref = jnp.broadcast_to(x_enc[:, -1:, -c_out:], (B, pred_len, c_out))
    assert out.shape == (B, pred_len, c_out), out.shape
    assert jnp.allclose(out, ref), "mismatch vs reference"

    print("KERNEL_OK")
</pallas_src>

<mosaic_0001>
module attributes {stable_mosaic.version = 11 : i64} {
  func.func @_persistence_kernel(%arg0: i32, %arg1: memref<8x1x3xf32, #tpu.memory_space<vmem>>, %arg2: memref<8x18xf32, #tpu.memory_space<vmem>>) attributes {dimension_semantics = [#tpu.dimension_semantics<parallel>], iteration_bounds = array<i64: 1>, scalar_prefetch = 0 : i64, scratch_operands = 0 : i64, tpu.core_type = #tpu.core_type<tc>, window_params = [{transform_indices = @transform_0, window_bounds = array<i64: 8, 1, 3>}, {transform_indices = @transform_1, window_bounds = array<i64: 8, 18>}]} {
    %c0 = arith.constant 0 : index
    %c0_0 = arith.constant 0 : index
    %c0_1 = arith.constant 0 : index
    %0 = vector.load %arg1[%c0, %c0_0, %c0_1] : memref<8x1x3xf32, #tpu.memory_space<vmem>>, vector<8x1x3xf32>
    %1 = vector.shape_cast %0 : vector<8x1x3xf32> to vector<8x3xf32>
    %2 = tpu.iota {dimensions = array<i32: 1>} : vector<8x18xi32>
    %c3_i32 = arith.constant 3 : i32
    %c0_i32 = arith.constant 0 : i32
    %3 = arith.cmpi eq, %c3_i32, %c0_i32 : i32
    %c1_i32 = arith.constant 1 : i32
    %4 = arith.select %3, %c1_i32, %c3_i32 : i32
    %5 = vector.broadcast %4 : i32 to vector<8x18xi32>
    %6 = arith.remsi %2, %5 : vector<8x18xi32>
    %c0_i32_2 = arith.constant 0 : i32
    %7 = vector.broadcast %c0_i32_2 : i32 to vector<8x18xi32>
    %8 = arith.cmpi ne, %6, %7 : vector<8x18xi32>
    %c0_i32_3 = arith.constant 0 : i32
    %9 = vector.broadcast %c0_i32_3 : i32 to vector<8x18xi32>
    %10 = arith.cmpi slt, %6, %9 : vector<8x18xi32>
    %c0_i32_4 = arith.constant 0 : i32
    %11 = arith.cmpi slt, %4, %c0_i32_4 : i32
    %12 = vector.broadcast %11 : i1 to vector<8x18xi1>
    %13 = vector.broadcast %12 : vector<8x18xi1> to vector<8x18xi1>
    %14 = arith.xori %10, %13 : vector<8x18xi1>
    %15 = arith.andi %14, %8 : vector<8x18xi1>
    %16 = vector.broadcast %4 : i32 to vector<8x18xi32>
    %17 = arith.addi %6, %16 : vector<8x18xi32>
    %18 = arith.select %15, %17, %6 : vector<8x18xi1>, vector<8x18xi32>
    %cst = arith.constant 0.000000e+00 : f32
    %19 = vector.broadcast %cst : f32 to vector<8x18xf32>
    %c0_i32_5 = arith.constant 0 : i32
    %20 = vector.broadcast %c0_i32_5 : i32 to vector<8x18xi32>
    %21 = arith.cmpi eq, %18, %20 : vector<8x18xi32>
    %22 = vector.extract_strided_slice %1 {offsets = [0, 0], sizes = [8, 1], strides = [1, 1]} : vector<8x3xf32> to vector<8x1xf32>
    %23 = vector.shape_cast %22 : vector<8x1xf32> to vector<8x1xf32>
    %24 = vector.broadcast %23 : vector<8x1xf32> to vector<8x18xf32>
    %25 = arith.select %21, %24, %19 : vector<8x18xi1>, vector<8x18xf32>
    %c1_i32_6 = arith.constant 1 : i32
    %26 = vector.broadcast %c1_i32_6 : i32 to vector<8x18xi32>
    %27 = arith.cmpi eq, %18, %26 : vector<8x18xi32>
    %28 = vector.extract_strided_slice %1 {offsets = [0, 1], sizes = [8, 1], strides = [1, 1]} : vector<8x3xf32> to vector<8x1xf32>
    %29 = vector.shape_cast %28 : vector<8x1xf32> to vector<8x1xf32>
    %30 = vector.broadcast %29 : vector<8x1xf32> to vector<8x18xf32>
    %31 = arith.select %27, %30, %25 : vector<8x18xi1>, vector<8x18xf32>
    %c2_i32 = arith.constant 2 : i32
    %32 = vector.broadcast %c2_i32 : i32 to vector<8x18xi32>
    %33 = arith.cmpi eq, %18, %32 : vector<8x18xi32>
    %34 = vector.extract_strided_slice %1 {offsets = [0, 2], sizes = [8, 1], strides = [1, 1]} : vector<8x3xf32> to vector<8x1xf32>
    %35 = vector.shape_cast %34 : vector<8x1xf32> to vector<8x1xf32>
    %36 = vector.broadcast %35 : vector<8x1xf32> to vector<8x18xf32>
    %37 = arith.select %33, %36, %31 : vector<8x18xi1>, vector<8x18xf32>
    %c0_7 = arith.constant 0 : index
    %c0_8 = arith.constant 0 : index
    %38 = vector.load %arg2[%c0_7, %c0_8] : memref<8x18xf32, #tpu.memory_space<vmem>>, vector<8x18xf32>
    tpu.vector_store %arg2[%c0_7, %c0_8], %37 {strides = array<i32>} : memref<8x18xf32, #tpu.memory_space<vmem>>, vector<8x18xf32>,
    return
  }
  func.func @transform_0(%arg0: i32) -> (i32, i32, i32) {
    %c0_i32 = arith.constant 0 : i32
    %c0_i32_0 = arith.constant 0 : i32
    %c0_i32_1 = arith.constant 0 : i32
    return %arg0, %c0_i32, %c0_i32_0 : i32, i32, i32
  }
  func.func @transform_1(%arg0: i32) -> (i32, i32) {
    %c0_i32 = arith.constant 0 : i32
    %c0_i32_0 = arith.constant 0 : i32
    return %arg0, %c0_i32 : i32, i32
  }
}

</mosaic_0001>

<bundles_post_ra>
// kernel: tpu_custom_call.1
= control target key start
LH: loop header
LB: loop body
LE: loop exit
PB: predicated region body
PF: predicated region fallthrough
CT: control target
= control target key end

     0   :  { %v319_v2 = vmov 0   ;;  %s373_s0 = inlined_call_operand.vmem [shape: f32[8,1,3], index: 0, kind: input, shape index: {}]   ;;  %s374_s1 = inlined_call_operand.hbm [shape: f32[8,18], index: 1, kind: output, shape index: {}]  }
   0x1   :  { %v11_v0 = vld [vmem:[%s373_s0 + $0x2] sm:$0x1]  ;;  %v9_v1 = vld [vmem:[%s373_s0] sm:$0x1]  ;;  %285 = vset.pattern.permute.xlu1 %v319_v2  ;;  %284 = vset.pattern.permute.xlu0 %v319_v2  ;;  %v13_v3 = vld [vmem:[%s373_s0 + $0x4] sm:$0x1] }
   0x2   :  { %68 = vperm.xlu1 %285, %v11_v0   ;;  %56 = vperm.xlu0 %284, %v9_v1  }
   0x3   :  { %286 = vset.pattern.permute.xlu2 %v319_v2 }
   0x4   :  { %6 = vsyncpa [#allocation3], 0  ;;  %80 = vperm.xlu2 %286, %v13_v3   ;;  %v12_v4 = vld [vmem:[%s373_s0 + $0x3] sm:$0x1]  ;;  %v10_v5 = vld [vmem:[%s373_s0 + $0x1] sm:$0x1]  ;;  %v17_v23 = vlaneseq }
   0x5   :  { %v14_v6 = vld [vmem:[%s373_s0 + $0x5] sm:$0x1]  ;;  %v16_v7 = vld [vmem:[%s373_s0 + $0x7] sm:$0x1]  ;;  %v15_v8 = vld [vmem:[%s373_s0 + $0x6] sm:$0x1] }
   0x6   :  { %v320_v9 = vmov 1   ;;  %v321_v10 = vmov 2   ;;  %v360_v26 = vand.u32 127, %v17_v23  ;;  %s322_s0 = smov [#allocation2]   ;;  %s271_s25 = sshll.u32 %s374_s1, 4  ;;  %vm262_vm8 = vcmask 146432   ;;  %s272_s25 = int_to_ptr.hbm [resolvable:$true] %s271_s25 }
   0x7   :  { %s269_s22 = sshll.u32 %s322_s0, 4  ;;  %s270_s22 = int_to_ptr.vmem [resolvable:$true] %s269_s22 }
   0x8   :  { %v22_v29 = vand.u32 65535, %v360_v26  ;;  %v23_v33 = vshrl.u32 %v360_v26, 16 }
   0xa   :  { %74 = vperm.xlu1 %285, %v12_v4   ;;  %62 = vperm.xlu0 %284, %v10_v5   ;;  %v26_v34 = vmul.u32 43690, %v22_v29  ;;  %v25_v36 = vmul.u32 43691, %v22_v29  ;;  %v27_v37 = vmul.u32 43691, %v23_v33  ;;  %v28_v49 = vmul.u32 43690, %v23_v33 }
   0xc   :  { %86 = vperm.xlu2 %286, %v14_v6   ;;  %v29_v38 = vshll.u32 %v26_v34, 16  ;;  %v31_v47 = vshll.u32 %v27_v37, 16  ;;  %v30_v58 = vshrl.u32 %v26_v34, 16  ;;  %v32_v63 = vshrl.u32 %v27_v37, 16 }
   0xe   :  { %vm33_vm0 = vc.u32 %v25_v36, %v29_v38  ;;  %v35_v48 = vadd.s32 %v29_v38, %v25_v36 }
   0xf   :  { %v34_v50 = vsel %vm33_vm0, 1, %v319_v2 }
  0x10   :  { %vm37_vm1 = vc.u32 %v35_v48, %v31_v47  ;;  %v36_v55 = vadd.s32 %v34_v50, %v28_v49 }
  0x11   :  { %v38_v56 = vsel %vm37_vm1, 1, %v319_v2 }
  0x12   :  { %98 = vperm.xlu1 %285, %v16_v7   ;;  %92 = vperm.xlu0 %284, %v15_v8   ;;  %v40_v59 = vadd.s32 %v38_v56, %v36_v55 }
  0x14   :  { %287 = vset.pattern.permute.xlu2 %v320_v9 }
  0x15   :  { %130 = vperm.xlu2 %287, %v9_v1  }
  0x1a   :  { %289 = vset.pattern.permute.xlu1 %v320_v9  ;;  %288 = vset.pattern.permute.xlu0 %v320_v9 }
  0x1b   :  { %140 = vperm.xlu1 %289, %v11_v0   ;;  %135 = vperm.xlu0 %288, %v10_v5  }
  0x1d   :  { %145 = vperm.xlu2 %287, %v12_v4  }
  0x23   :  { %150 = vperm.xlu1 %289, %v13_v3   ;;  %160 = vperm.xlu0 %288, %v15_v8  }
  0x25   :  { %155 = vperm.xlu2 %287, %v14_v6  }
  0x2b   :  { %165 = vperm.xlu1 %289, %v16_v7   ;;  %291 = vset.pattern.permute.xlu0 %v321_v10 }
  0x2c   :  { %202 = vperm.xlu0 %291, %v10_v5  }
  0x2d   :  { %290 = vset.pattern.permute.xlu2 %v321_v10 }
  0x2e   :  { %197 = vperm.xlu2 %290, %v9_v1  }
  0x33   :  { %292 = vset.pattern.permute.xlu1 %v321_v10 }
  0x34   :  { %207 = vperm.xlu1 %292, %v11_v0   ;;  %227 = vperm.xlu0 %291, %v15_v8   ;;  %v41_v0 = vadd.s32 %v40_v59, %v30_v58 }
  0x36   :  { %212 = vperm.xlu2 %290, %v12_v4   ;;  %v42_v1 = vadd.s32 %v41_v0, %v32_v63 }
  0x38   :  { %v43_v8 = vshrl.u32 %v42_v1, 1 }
  0x3c   :  { %217 = vperm.xlu1 %292, %v13_v3  }
  0x3e   :  { %222 = vperm.xlu2 %290, %v14_v6  }
  0x44   :  { %232 = vperm.xlu1 %292, %v16_v7  }
  0x5e   :  { %v81_v11 = vpop.permute.xlu2 %80 }
  0x5f   :  { %v83_v12 = vperm.slane %v81_v11, 0 }
  0x61   :  { %118 = vst [vmem:[#allocation1 + $0x4] ss:$9 sm:$0xff] %v83_v12 }
  0x66   :  { %v87_v13 = vpop.permute.xlu2 %86 }
  0x67   :  { %v89_v14 = vperm.slane %v87_v13, 0  ;;  %v44_v13 = vmul.u32 3, %v43_v8 }
  0x69   :  { %120 = vst [vmem:[#allocation1 + $0x5] ss:$9 sm:$0xff] %v89_v14 }
  0x6f   :  { %v131_v15 = vpop.permute.xlu2 %130 }
  0x70   :  { %v133_v35 = vperm.slane %v131_v15, 0 }
  0x74   :  { %v69_v16 = vpop.permute.xlu1 %68  ;;  %v57_v17 = vpop.permute.xlu0 %56 }
  0x75   :  { %v71_v18 = vperm.slane %v69_v16, 0  ;;  %v59_v19 = vperm.slane %v57_v17, 0  ;;  %v45_v16 = vsub.s32 %v360_v26, %v44_v13 }
  0x77   :  { %114 = vst [vmem:[#allocation1 + $0x2] ss:$9 sm:$0xff] %v71_v18  ;;  %v146_v20 = vpop.permute.xlu2 %145  ;;  %vm48_vm2 = vcmp.ne.s32.totalorder %v45_v16, 0  ;;  %vm49_vm3 = vcmp.lt.s32.totalorder %v45_v16, 0  ;;  %v51_v17 = vadd.s32 3, %v45_v16 }
  0x78   :  { %110 = vst [vmem:[#allocation1] ss:$9 sm:$0xff] %v59_v19  ;;  %v148_v39 = vperm.slane %v146_v20, 0  ;;  %vm50_vm4 = vmand %vm49_vm3, %vm48_vm2 }
  0x79   :  { %v52_v20 = vsel %vm50_vm4, %v51_v17, %v45_v16 }
  0x7a   :  { %vm53_vm5 = vcmp.eq.s32.totalorder %v52_v20, 0  ;;  %vm128_vm6 = vcmp.eq.s32.totalorder %v52_v20, 1  ;;  %vm195_vm7 = vcmp.eq.s32.totalorder %v52_v20, 2 }
  0x7c   :  { %v75_v21 = vpop.permute.xlu1 %74  ;;  %v63_v22 = vpop.permute.xlu0 %62 }
  0x7d   :  { %v77_v24 = vperm.slane %v75_v21, 0  ;;  %v65_v25 = vperm.slane %v63_v22, 0 }
  0x7f   :  { %116 = vst [vmem:[#allocation1 + $0x3] ss:$9 sm:$0xff] %v77_v24  ;;  %v156_v32 = vpop.permute.xlu2 %155 }
  0x80   :  { %112 = vst [vmem:[#allocation1 + $0x1] ss:$9 sm:$0xff] %v65_v25  ;;  %v158_v44 = vperm.slane %v156_v32, 0 }
  0x84   :  { %v99_v27 = vpop.permute.xlu1 %98  ;;  %v93_v28 = vpop.permute.xlu0 %92 }
  0x85   :  { %v101_v30 = vperm.slane %v99_v27, 0  ;;  %v95_v31 = vperm.slane %v93_v28, 0 }
  0x87   :  { %124 = vst [vmem:[#allocation1 + $0x7] ss:$9 sm:$0xff] %v101_v30 }
  0x88   :  { %122 = vst [vmem:[#allocation1 + $0x6] ss:$9 sm:$0xff] %v95_v31  ;;  %v198_v46 = vpop.permute.xlu2 %197 }
  0x89   :  { %v200_v5 = vperm.slane %v198_v46, 0 }
  0x8d   :  { %v141_v40 = vpop.permute.xlu1 %140  ;;  %v136_v41 = vpop.permute.xlu0 %135 }
  0x8e   :  { %v143_v42 = vperm.slane %v141_v40, 0  ;;  %v138_v45 = vperm.slane %v136_v41, 0 }
  0x8f   :  { %v364_v43 = vld [vmem:[#allocation1] sm:$0xff] }
  0x90   :  { %177 = vst [vmem:[#allocation1] ss:$9 sm:$0xff] %v133_v35  ;;  %v213_v57 = vpop.permute.xlu2 %212  ;;  %v127_v21 = vsel %vm53_vm5, %v364_v43, 0.0 }
  0x91   :  { %183 = vst [vmem:[#allocation1 + $0x3] ss:$9 sm:$0xff] %v148_v39  ;;  %v215_v3 = vperm.slane %v213_v57, 0 }
  0x92   :  { %181 = vst [vmem:[#allocation1 + $0x2] ss:$9 sm:$0xff] %v143_v42 }
  0x93   :  { %187 = vst [vmem:[#allocation1 + $0x5] ss:$9 sm:$0xff] %v158_v44 }
  0x94   :  { %179 = vst [vmem:[#allocation1 + $0x1] ss:$9 sm:$0xff] %v138_v45 }
  0x95   :  { %v151_v51 = vpop.permute.xlu1 %150  ;;  %v161_v52 = vpop.permute.xlu0 %160 }
  0x96   :  { %v153_v53 = vperm.slane %v151_v51, 0  ;;  %v163_v54 = vperm.slane %v161_v52, 0 }
  0x98   :  { %185 = vst [vmem:[#allocation1 + $0x4] ss:$9 sm:$0xff] %v153_v53  ;;  %v223_v4 = vpop.permute.xlu2 %222 }
  0x99   :  { %189 = vst [vmem:[#allocation1 + $0x6] ss:$9 sm:$0xff] %v163_v54  ;;  %v225_v10 = vperm.slane %v223_v4, 0 }
  0x9d   :  { %v166_v60 = vpop.permute.xlu1 %165 }
  0x9e   :  { %v168_v61 = vperm.slane %v166_v60, 0  ;;  %v203_v62 = vpop.permute.xlu0 %202 }
  0x9f   :  { %v205_v11 = vperm.slane %v203_v62, 0 }
  0xa0   :  { %191 = vst [vmem:[#allocation1 + $0x7] ss:$9 sm:$0xff] %v168_v61 }
  0xa6   :  { %v208_v6 = vpop.permute.xlu1 %207  ;;  %v228_v7 = vpop.permute.xlu0 %227 }
  0xa7   :  { %v192_v9 = vld [vmem:[#allocation1] sm:$0xff]  ;;  %v210_v2 = vperm.slane %v208_v6, 0  ;;  %v230_v12 = vperm.slane %v228_v7, 0 }
  0xa8   :  { %250 = vst [vmem:[#allocation1 + $0x3] ss:$9 sm:$0xff] %v215_v3  ;;  %v194_v22 = vsel %vm128_vm6, %v192_v9, %v127_v21 }
  0xa9   :  { %244 = vst [vmem:[#allocation1] ss:$9 sm:$0xff] %v200_v5 }
  0xaa   :  { %248 = vst [vmem:[#allocation1 + $0x2] ss:$9 sm:$0xff] %v210_v2 }
  0xab   :  { %254 = vst [vmem:[#allocation1 + $0x5] ss:$9 sm:$0xff] %v225_v10 }
  0xac   :  { %246 = vst [vmem:[#allocation1 + $0x1] ss:$9 sm:$0xff] %v205_v11 }
  0xad   :  { %256 = vst [vmem:[#allocation1 + $0x6] ss:$9 sm:$0xff] %v230_v12 }
  0xae   :  { %v218_v14 = vpop.permute.xlu1 %217 }
  0xaf   :  { %v220_v15 = vperm.slane %v218_v14, 0 }
  0xb1   :  { %252 = vst [vmem:[#allocation1 + $0x4] ss:$9 sm:$0xff] %v220_v15 }
  0xb6   :  { %v233_v18 = vpop.permute.xlu1 %232 }
  0xb7   :  { %v235_v19 = vperm.slane %v233_v18, 0 }
  0xb9   :  { %258 = vst [vmem:[#allocation1 + $0x7] ss:$9 sm:$0xff] %v235_v19 }
  0xc0   :  { %v259_v23 = vld [vmem:[#allocation1] sm:$0xff] }
  0xc1   :  { %v261_v24 = vsel %vm195_vm7, %v259_v23, %v194_v22 }
  0xc2   :  { %263 = vst.msk [vmem:[#allocation2] sm:$0xff] %vm262_vm8, %v261_v24 }
  0xc3   :  { %274 = dma.vmem_to_hbm [thread:$0]  %s270_s22, 128, %s272_s25, [#allocation3]  }
  0xc4   :  { %317 = dma.done.wait [#allocation3], 128  }
  0xc5   :  { %318 = vsyncadd [#allocation3], 4294967168 }
  0xc6   :  { %279 = vsyncpa [#allocation3], 1 }

</bundles_post_ra>
